<compile_context>
chip_gen: v7x
topology: tpu7x:2x2x1
jax: 0.10.0
libtpu: 0.0.40
codegen_flags: <defaults>
</compile_context>

<pallas_src>
import functools
import math

import jax
import jax.numpy as jnp
from jax.experimental import pallas as pl
from jax.experimental.pallas import tpu as pltpu


def _fused_matmul_bias_kernel(p_ref, w_ref, bias_ref, o_ref):
    # p_ref:   (tm, K)        compute_dtype (bf16 by default)
    # w_ref:   (K, Cout_p)    compute_dtype  (LoRA already folded in)
    # bias_ref:(1, Cout_p)    f32
    # o_ref:   (tm, Cout_p)   x.dtype  -- lane-dense (Cout_p multiple of 128)
    acc = jnp.dot(p_ref[...], w_ref[...], preferred_element_type=jnp.float32)
    o_ref[...] = (acc + bias_ref[...]).astype(o_ref.dtype)


def _im2col(x, ksize, stride, padding, dilation):
    """x: [N, Cin, D, H, W] -> patches [M, K], (N, Do, Ho, Wo).

    K ordering is Cin-major / tap-minor, matching PyTorch's
    weight.reshape(Cout, Cin*kD*kH*kW) flattening.
    """
    N, Cin, D, H, W = x.shape
    kD, kH, kW = ksize
    sD, sH, sW = stride
    pD, pH, pW = padding
    dD, dH, dW = dilation
    xp = jnp.pad(x, ((0, 0), (0, 0), (pD, pD), (pH, pH), (pW, pW)))
    Do = (D + 2 * pD - dD * (kD - 1) - 1) // sD + 1
    Ho = (H + 2 * pH - dH * (kH - 1) - 1) // sH + 1
    Wo = (W + 2 * pW - dW * (kW - 1) - 1) // sW + 1
    taps = []
    for kd in range(kD):
        for kh in range(kH):
            for kw in range(kW):
                sl = xp[:, :,
                        kd * dD: kd * dD + sD * (Do - 1) + 1: sD,
                        kh * dH: kh * dH + sH * (Ho - 1) + 1: sH,
                        kw * dW: kw * dW + sW * (Wo - 1) + 1: sW]
                taps.append(sl)                     # [N, Cin, Do, Ho, Wo]
    pt = jnp.stack(taps, axis=0)                    # [T, N, Cin, Do, Ho, Wo]
    pt = jnp.transpose(pt, (1, 3, 4, 5, 2, 0))      # [N, Do, Ho, Wo, Cin, T]
    M = N * Do * Ho * Wo
    K = Cin * kD * kH * kW
    return pt.reshape(M, K), (N, Do, Ho, Wo)


def _choose_tm(M, K, cout_p, in_bytes, out_bytes, vmem_budget):
    """Largest power-of-two M-tile whose double-buffered streams fit the VMEM
    budget, then shrunk (>=128) until the grid has >= 2 steps (keeps both v7x
    TensorCores busy via the "parallel" grid axis)."""
    weight_bytes = K * cout_p * in_bytes + cout_p * 4
    tm = 1024
    while tm > 128 and weight_bytes + 2 * tm * (K * in_bytes + cout_p * out_bytes) > vmem_budget:
        tm //= 2
    while tm > 128 and pl.cdiv(M, tm) < 2:
        tm //= 2
    return tm


def lora_conv3d_forward(x, w_orig, bias, w_a, w_b, *,
                        stride=(1, 1, 1), padding=(1, 1, 1),
                        dilation=(1, 1, 1), scaling=4.0,
                        compute_dtype=jnp.bfloat16):
    """x: [N, Cin, D, H, W] (NCDHW like PyTorch). Returns NCDHW output in x.dtype."""
    Cout, Cin, kD, kH, kW = w_orig.shape
    r = w_a.shape[0]
    K = Cin * kD * kH * kW

    # ---- Fold the LoRA branch into the frozen weight (exact for dropout==0) ----
    w_orig_mat = w_orig.reshape(Cout, K).T.astype(jnp.float32)     # [K, Cout]
    w_a_mat = w_a.reshape(r, K).T.astype(jnp.float32)              # [K, r]
    w_b_mat = w_b.reshape(Cout, r).T.astype(jnp.float32)           # [r, Cout]
    w_eff = w_orig_mat + scaling * (w_a_mat @ w_b_mat)             # [K, Cout] f32

    # Lane-dense output: pad Cout up to a multiple of 128 (zero columns).
    cout_p = max(128, ((Cout + 127) // 128) * 128)
    w_eff = jnp.pad(w_eff, ((0, 0), (0, cout_p - Cout))).astype(compute_dtype)
    if bias is None:
        bias = jnp.zeros((Cout,), jnp.float32)
    bias_row = jnp.pad(bias.astype(jnp.float32), (0, cout_p - Cout)).reshape(1, cout_p)

    # ---- im2col patch matrix, streamed in compute_dtype (bf16 halves HBM) ----
    P, (N, Do, Ho, Wo) = _im2col(x.astype(compute_dtype), (kD, kH, kW),
                                 stride, padding, dilation)
    M = N * Do * Ho * Wo

    in_b = jnp.finfo(compute_dtype).bits // 8
    out_b = jnp.finfo(x.dtype).bits // 8
    tm = _choose_tm(M, K, cout_p, in_b, out_b, vmem_budget=20 * 1024 * 1024)

    out = pl.pallas_call(
        _fused_matmul_bias_kernel,
        out_shape=jax.ShapeDtypeStruct((M, cout_p), x.dtype),
        grid_spec=pltpu.PrefetchScalarGridSpec(
            num_scalar_prefetch=0,
            grid=(pl.cdiv(M, tm),),
            in_specs=[
                pl.BlockSpec((tm, K), lambda i: (i, 0)),        # P tile
                pl.BlockSpec((K, cout_p), lambda i: (0, 0)),    # folded weight
                pl.BlockSpec((1, cout_p), lambda i: (0, 0)),    # bias row (f32)
            ],
            out_specs=pl.BlockSpec((tm, cout_p), lambda i: (i, 0)),
        ),
        compiler_params=pltpu.CompilerParams(
            dimension_semantics=("parallel",),
            vmem_limit_bytes=32 * 1024 * 1024),
    )(P, w_eff, bias_row)

    out = out[:, :Cout].reshape(N, Do, Ho, Wo, Cout)
    return jnp.transpose(out, (0, 4, 1, 2, 3))                    # back to NCDHW


def _reference(x, w_orig, bias, w_a, w_b, *, stride, padding, dilation, scaling):
    dn = ("NCDHW", "OIDHW", "NCDHW")
    pad = [(p, p) for p in padding]
    res = jax.lax.conv_general_dilated(x, w_orig, window_strides=stride,
                                       padding=pad, rhs_dilation=dilation,
                                       dimension_numbers=dn)
    res = res + bias[None, :, None, None, None]
    a = jax.lax.conv_general_dilated(x, w_a, window_strides=stride,
                                     padding=pad, rhs_dilation=dilation,
                                     dimension_numbers=dn)
    b = jax.lax.conv_general_dilated(a, w_b, window_strides=(1, 1, 1),
                                     padding="VALID", dimension_numbers=dn)
    return res + scaling * b


if __name__ == "__main__":
    # Small shapes consistent with an nn.Conv3d(4, 8, kernel_size=3, padding=1)
    # wrapped in LoRAConv3d(r=4, alpha=16) -> scaling = 4.0.
    N, Cin, Cout = 2, 4, 8
    D = H = W = 8
    k = (3, 3, 3)
    stride = (1, 1, 1)
    padding = (1, 1, 1)
    dilation = (1, 1, 1)
    r, alpha = 4, 16
    scaling = alpha / r

    key = jax.random.PRNGKey(0)
    kx, kw, kb, ka, kbb = jax.random.split(key, 5)
    x = jax.random.normal(kx, (N, Cin, D, H, W), jnp.float32)
    fan_in = Cin * k[0] * k[1] * k[2]
    bound = 1.0 / math.sqrt(fan_in)
    w_orig = jax.random.uniform(kw, (Cout, Cin, *k), jnp.float32, -bound, bound)
    bias = jax.random.uniform(kb, (Cout,), jnp.float32, -bound, bound)
    # kaiming_uniform_(a=sqrt(5)) on lora_A -> uniform(-1/sqrt(fan_in), 1/sqrt(fan_in))
    w_a = jax.random.uniform(ka, (r, Cin, *k), jnp.float32, -bound, bound)
    # NOTE: the module zero-inits lora_B; use a nonzero deterministic init
    # here so the LoRA path actually exercises the kernel.
    w_b = jax.random.uniform(kbb, (Cout, r, 1, 1, 1), jnp.float32, -0.1, 0.1)

    ref = _reference(x, w_orig, bias, w_a, w_b, stride=stride,
                     padding=padding, dilation=dilation, scaling=scaling)

    # Exact f32-stream path (sanity check of the folded formulation).
    fwd_f32 = jax.jit(functools.partial(
        lora_conv3d_forward, stride=stride, padding=padding, dilation=dilation,
        scaling=scaling, compute_dtype=jnp.float32))
    out_f32 = jax.block_until_ready(fwd_f32(x, w_orig, bias, w_a, w_b))
    assert out_f32.shape == ref.shape == (N, Cout, D, H, W)
    assert jnp.allclose(out_f32, ref, atol=1e-4, rtol=1e-4), \
        float(jnp.max(jnp.abs(out_f32 - ref)))

    # Default fast path: bf16 operand streams, f32 accumulation.
    fwd_bf16 = jax.jit(functools.partial(
        lora_conv3d_forward, stride=stride, padding=padding, dilation=dilation,
        scaling=scaling, compute_dtype=jnp.bfloat16))
    out_bf16 = jax.block_until_ready(fwd_bf16(x, w_orig, bias, w_a, w_b))
    assert out_bf16.shape == ref.shape
    assert jnp.allclose(out_bf16, ref, atol=5e-2, rtol=5e-2), \
        float(jnp.max(jnp.abs(out_bf16 - ref)))

    print("KERNEL_OK")
</pallas_src>

<mosaic_0001>
module attributes {stable_mosaic.version = 11 : i64} {
  func.func @_fused_matmul_bias_kernel(%arg0: i32, %arg1: memref<512x108xf32, #tpu.memory_space<vmem>>, %arg2: memref<108x128xf32, #tpu.memory_space<vmem>>, %arg3: memref<1x128xf32, #tpu.memory_space<vmem>>, %arg4: memref<512x128xf32, #tpu.memory_space<vmem>>) attributes {dimension_semantics = [#tpu.dimension_semantics<parallel>], iteration_bounds = array<i64: 2>, scalar_prefetch = 0 : i64, scratch_operands = 0 : i64, tpu.core_type = #tpu.core_type<tc>, window_params = [{transform_indices = @transform_0, window_bounds = array<i64: 512, 108>}, {pipeline_mode = #tpu.pipeline_mode<synchronous>, transform_indices = @transform_1, window_bounds = array<i64: 108, 128>}, {pipeline_mode = #tpu.pipeline_mode<synchronous>, transform_indices = @transform_2, window_bounds = array<i64: 1, 128>}, {transform_indices = @transform_3, window_bounds = array<i64: 512, 128>}]} {
    %c0 = arith.constant 0 : index
    %c0_0 = arith.constant 0 : index
    %0 = vector.load %arg1[%c0, %c0_0] : memref<512x108xf32, #tpu.memory_space<vmem>>, vector<512x108xf32>
    %c0_1 = arith.constant 0 : index
    %c0_2 = arith.constant 0 : index
    %1 = vector.load %arg2[%c0_1, %c0_2] : memref<108x128xf32, #tpu.memory_space<vmem>>, vector<108x128xf32>
    %cst = arith.constant dense<0.000000e+00> : vector<512x128xf32>
    %2 = tpu.matmul %0, %1, %cst {dimension_numbers = #tpu.dot_dimension_numbers<[1], [0], [0], [1], [0, 0, 1, 1], [], []>} : vector<512x108xf32>, vector<108x128xf32>, vector<512x128xf32> -> vector<512x128xf32>
    %c0_3 = arith.constant 0 : index
    %c0_4 = arith.constant 0 : index
    %3 = vector.load %arg3[%c0_3, %c0_4] : memref<1x128xf32, #tpu.memory_space<vmem>>, vector<1x128xf32>
    %4 = vector.broadcast %3 : vector<1x128xf32> to vector<512x128xf32>
    %5 = arith.addf %2, %4 : vector<512x128xf32>
    %c0_5 = arith.constant 0 : index
    %c0_6 = arith.constant 0 : index
    %6 = vector.load %arg4[%c0_5, %c0_6] : memref<512x128xf32, #tpu.memory_space<vmem>>, vector<512x128xf32>
    tpu.vector_store %arg4[%c0_5, %c0_6], %5 {strides = array<i32>} : memref<512x128xf32, #tpu.memory_space<vmem>>, vector<512x128xf32>,
    return
  }
  func.func @transform_0(%arg0: i32) -> (i32, i32) {
    %c0_i32 = arith.constant 0 : i32
    %c0_i32_0 = arith.constant 0 : i32
    return %arg0, %c0_i32 : i32, i32
  }
  func.func @transform_1(%arg0: i32) -> (i32, i32) {
    %c0_i32 = arith.constant 0 : i32
    %c0_i32_0 = arith.constant 0 : i32
    %c0_i32_1 = arith.constant 0 : i32
    return %c0_i32, %c0_i32_0 : i32, i32
  }
  func.func @transform_2(%arg0: i32) -> (i32, i32) {
    %c0_i32 = arith.constant 0 : i32
    %c0_i32_0 = arith.constant 0 : i32
    %c0_i32_1 = arith.constant 0 : i32
    return %c0_i32, %c0_i32_0 : i32, i32
  }
  func.func @transform_3(%arg0: i32) -> (i32, i32) {
    %c0_i32 = arith.constant 0 : i32
    %c0_i32_0 = arith.constant 0 : i32
    return %arg0, %c0_i32 : i32, i32
  }
}

</mosaic_0001>

<bundles_post_ra>
// kernel: lora_conv3d_forward.1
= control target key start
LH: loop header
LB: loop body
LE: loop exit
PB: predicated region body
PF: predicated region fallthrough
CT: control target
= control target key end

     0   :  { %s1322_s12 = smov 0   ;;  %s1653_s0 = inlined_call_operand.vmem [shape: f32[1024,108], index: 0, kind: input, shape index: {}]   ;;  %s1654_s1 = inlined_call_operand.vmem [shape: f32[108,128], index: 1, kind: input, shape index: {}]   ;;  %s1655_s2 = inlined_call_operand.vmem [shape: f32[1,128], index: 2, kind: input, shape index: {}]   ;;  %s1656_s3 = inlined_call_operand.vmem [shape: f32[1024,128], index: 3, kind: output, shape index: {}]  }
   0x1 LB: > { %s961_s13 = sadd.s32 4294967295, %s1299_s12   ;;  %p965_p0 = scmp.ge.s32.totalorder %s1299_s12, 1  ;;  %s1299_s12 = sphi %s1322_s12, %s13_s12  }
   0x2   : > { %p138_p1 = scmp.lt.s32.totalorder %s1299_s12, 3 }
   0x4   : > { %p139_p2 = pnand %p965_p0, %p138_p1 }
   0x5   : > { %v238_v0 = vld [vmem:[%s1654_s1] sm:$0xff] (!%p139_p2)  ;;  %v239_v1 = vld [vmem:[%s1654_s1 + $0x8] sm:$0xff] (!%p139_p2)  ;;  %v240_v2 = vld [vmem:[%s1654_s1 + $0x10] sm:$0xff] (!%p139_p2)  ;;  %s966_s20 = sshll.u32 (!%p139_p2), %s961_s13, 6  ;;  %vm259_vm0 = vcmask (!%p139_p2), 883712   ;;  %vm452_vm1 = vcmask (!%p139_p2), 1043456  }
   0x6   : > { %142 = sbr.rel (%p139_p2) target bundleno = 313 (0x139), region = 32  ;;  %v1240_v3 = vpack.c.bf16 (!%p139_p2), %v239_v1, %v238_v0  ;;  %v241_v4 = vld [vmem:[%s1654_s1 + $0x18] sm:$0xff] (!%p139_p2)  ;;  %p163_p3 = scmp.lt.s32.totalorder (!%p139_p2), %s966_s20, 127  ;;  %v242_v6 = vld [vmem:[%s1654_s1 + $0x20] sm:$0xff] (!%p139_p2)  ;;  %v243_v7 = vld [vmem:[%s1654_s1 + $0x28] sm:$0xff] (!%p139_p2)  ;;  %vm1301_vm2 = vmmov (!%p139_p2), 1  }
   0x7   : > { %v1244_v5 = vpack.c.bf16 (!%p139_p2), %v241_v4, %v240_v2  ;;  %v1248_v8 = vpack.c.bf16 (!%p139_p2), %v243_v7, %v242_v6  ;;  %v244_v9 = vld [vmem:[%s1654_s1 + $0x30] sm:$0xff] (!%p139_p2)  ;;  %v245_v10 = vld [vmem:[%s1654_s1 + $0x38] sm:$0xff] (!%p139_p2)  ;;  %v246_v14 = vld [vmem:[%s1654_s1 + $0x40] sm:$0xff] (!%p139_p2) }
   0x8   : > { %1241 = vmatprep.subr.bf16.mxu0 (!%p139_p2), %v1240_v3  ;;  %1270 = vmatprep.subr.bf16.mxu1 (!%p139_p2), %v1240_v3  ;;  %v1252_v13 = vpack.c.bf16 (!%p139_p2), %v245_v10, %v244_v9  ;;  %v247_v15 = vld [vmem:[%s1654_s1 + $0x48] sm:$0xff] (!%p139_p2)  ;;  %v248_v17 = vld [vmem:[%s1654_s1 + $0x50] sm:$0xff] (!%p139_p2)  ;;  %v249_v18 = vld [vmem:[%s1654_s1 + $0x58] sm:$0xff] (!%p139_p2) }
   0x9   : > { %1243 = vmatpush3.bf16.msra.mxu0 (!%p139_p2), %v1240_v3  ;;  %1277 = vmatpush3.bf16.msra.mxu1 (!%p139_p2), %v1240_v3  ;;  %v1256_v16 = vpack.c.bf16 (!%p139_p2), %v247_v15, %v246_v14  ;;  %v1260_v19 = vpack.c.bf16 (!%p139_p2), %v249_v18, %v248_v17  ;;  %v250_v20 = vld [vmem:[%s1654_s1 + $0x60] sm:$0xff] (!%p139_p2)  ;;  %v251_v21 = vld [vmem:[%s1654_s1 + $0x68] sm:$0xf] (!%p139_p2)  ;;  %vm1265_vm3 = vmpackc.low (!%p139_p2), %vm452_vm1, %vm1301_vm2 }
   0xa   : > { %1245 = vmatprep.subr.bf16.mxu0 (!%p139_p2), %v1244_v5  ;;  %1271 = vmatprep.subr.bf16.mxu1 (!%p139_p2), %v1244_v5  ;;  %v1264_v22 = vpack.c.bf16 (!%p139_p2), %v251_v21, %v250_v20  ;;  %v1513_v21 = vld [vmem:[%s1655_s2] ss:$0 sm:$0xff] (!%p139_p2) }
   0xd   : > { %s1658_s20 = smov (!%p163_p3, %s966_s20), 127  ;;  %1247 = vmatpush3.bf16.msra.mxu0 %v1244_v5  ;;  %1278 = vmatpush3.bf16.msra.mxu1 %v1244_v5 }
   0xe   : > { %s967_s27 = sshll.u32 %s1658_s20, 3  ;;  %1249 = vmatprep.subr.bf16.mxu0 %v1248_v8  ;;  %1272 = vmatprep.subr.bf16.mxu1 %v1248_v8 }
   0xf   : > { %s1362_s7 = scalar_lea.vmem %s1653_s0, %s967_s27  ;;  %s1520_s26 = scalar_lea.vmem %s1656_s3, %s967_s27 }
  0x10   : > { %v174_v11 = vld [vmem:[%s1362_s7] sm:$0xff]  ;;  %v175_v23 = vld [vmem:[%s1362_s7 + $0x8] sm:$0xff]  ;;  %v176_v25 = vld [vmem:[%s1362_s7 + $0x10] sm:$0xff] }
  0x11   : > { %v206_v12 = vld [vmem:[%s1362_s7 + $0x100] sm:$0xff]  ;;  %1144 = vmatprep.mubr.msk.f32.mxu0 %vm259_vm0, %v174_v11  ;;  %1251 = vmatpush3.bf16.msra.mxu0 %v1248_v8  ;;  %v207_v24 = vld [vmem:[%s1362_s7 + $0x108] sm:$0xff]  ;;  %v208_v26 = vld [vmem:[%s1362_s7 + $0x110] sm:$0xff] }
  0x12   : > { %1192 = vmatprep.mubr.msk.f32.mxu1 %vm259_vm0, %v206_v12  ;;  %1279 = vmatpush3.bf16.msra.mxu1 %v1248_v8  ;;  %v177_v27 = vld [vmem:[%s1362_s7 + $0x18] sm:$0xff]  ;;  %v178_v29 = vld [vmem:[%s1362_s7 + $0x20] sm:$0xff]  ;;  %v179_v31 = vld [vmem:[%s1362_s7 + $0x28] sm:$0xff] }
  0x13   : > { %1253 = vmatprep.subr.bf16.mxu0 %v1252_v13  ;;  %1273 = vmatprep.subr.bf16.mxu1 %v1252_v13  ;;  %v209_v28 = vld [vmem:[%s1362_s7 + $0x118] sm:$0xff]  ;;  %v210_v30 = vld [vmem:[%s1362_s7 + $0x120] sm:$0xff]  ;;  %v211_v32 = vld [vmem:[%s1362_s7 + $0x128] sm:$0xff] }
  0x14   : > { %v180_v33 = vld [vmem:[%s1362_s7 + $0x30] sm:$0xff]  ;;  %v181_v35 = vld [vmem:[%s1362_s7 + $0x38] sm:$0xff]  ;;  %v182_v37 = vld [vmem:[%s1362_s7 + $0x40] sm:$0xff] }
  0x15   : > { %1255 = vmatpush3.bf16.msra.mxu0 %v1252_v13  ;;  %v212_v34 = vld [vmem:[%s1362_s7 + $0x130] sm:$0xff]  ;;  %v213_v36 = vld [vmem:[%s1362_s7 + $0x138] sm:$0xff]  ;;  %v214_v38 = vld [vmem:[%s1362_s7 + $0x140] sm:$0xff] }
  0x16   : > { %1280 = vmatpush3.bf16.msra.mxu1 %v1252_v13  ;;  %1257 = vmatprep.subr.bf16.mxu0 %v1256_v16  ;;  %v183_v39 = vld [vmem:[%s1362_s7 + $0x48] sm:$0xff]  ;;  %v184_v41 = vld [vmem:[%s1362_s7 + $0x50] sm:$0xff]  ;;  %v185_v43 = vld [vmem:[%s1362_s7 + $0x58] sm:$0xff] }
  0x17   : > { %1274 = vmatprep.subr.bf16.mxu1 %v1256_v16  ;;  %v215_v40 = vld [vmem:[%s1362_s7 + $0x148] sm:$0xff]  ;;  %v216_v42 = vld [vmem:[%s1362_s7 + $0x150] sm:$0xff]  ;;  %v217_v44 = vld [vmem:[%s1362_s7 + $0x158] sm:$0xff] }
  0x18   : > { %v186_v45 = vld [vmem:[%s1362_s7 + $0x60] sm:$0xff]  ;;  %v187_v47 = vld [vmem:[%s1362_s7 + $0x68] sm:$0xff]  ;;  %v188_v49 = vld [vmem:[%s1362_s7 + $0x70] sm:$0xff] }
  0x19   : > { %1259 = vmatpush3.bf16.msra.mxu0 %v1256_v16  ;;  %v218_v46 = vld [vmem:[%s1362_s7 + $0x160] sm:$0xff]  ;;  %v219_v48 = vld [vmem:[%s1362_s7 + $0x168] sm:$0xff]  ;;  %v220_v50 = vld [vmem:[%s1362_s7 + $0x170] sm:$0xff] }
  0x1a   : > { %1281 = vmatpush3.bf16.msra.mxu1 %v1256_v16  ;;  %1261 = vmatprep.subr.bf16.mxu0 %v1260_v19  ;;  %v189_v51 = vld [vmem:[%s1362_s7 + $0x78] sm:$0xff]  ;;  %v190_v53 = vld [vmem:[%s1362_s7 + $0x80] sm:$0xff]  ;;  %v191_v55 = vld [vmem:[%s1362_s7 + $0x88] sm:$0xff] }
  0x1b   : > { %1275 = vmatprep.subr.bf16.mxu1 %v1260_v19  ;;  %v221_v52 = vld [vmem:[%s1362_s7 + $0x178] sm:$0xff]  ;;  %v222_v54 = vld [vmem:[%s1362_s7 + $0x180] sm:$0xff]  ;;  %v223_v56 = vld [vmem:[%s1362_s7 + $0x188] sm:$0xff] }
  0x1c   : > { %v192_v57 = vld [vmem:[%s1362_s7 + $0x90] sm:$0xff]  ;;  %v193_v59 = vld [vmem:[%s1362_s7 + $0x98] sm:$0xff]  ;;  %v194_v61 = vld [vmem:[%s1362_s7 + $0xa0] sm:$0xff] }
  0x1d   : > { %1263 = vmatpush3.bf16.msra.mxu0 %v1260_v19  ;;  %v224_v58 = vld [vmem:[%s1362_s7 + $0x190] sm:$0xff]  ;;  %v225_v60 = vld [vmem:[%s1362_s7 + $0x198] sm:$0xff]  ;;  %v226_v62 = vld [vmem:[%s1362_s7 + $0x1a0] sm:$0xff] }
  0x1e   : > { %1282 = vmatpush3.bf16.msra.mxu1 %v1260_v19  ;;  %1266 = vmatprep.subr.msk.bf16.mxu0 %vm1265_vm3, %v1264_v22  ;;  %v195_v63 = vld [vmem:[%s1362_s7 + $0xa8] sm:$0xff]  ;;  %v196_v1 = vld [vmem:[%s1362_s7 + $0xb0] sm:$0xff]  ;;  %v197_v3 = vld [vmem:[%s1362_s7 + $0xb8] sm:$0xff] }
  0x1f   : > { %1276 = vmatprep.subr.msk.bf16.mxu1 %vm1265_vm3, %v1264_v22  ;;  %v227_v0 = vld [vmem:[%s1362_s7 + $0x1a8] sm:$0xff]  ;;  %v228_v2 = vld [vmem:[%s1362_s7 + $0x1b0] sm:$0xff]  ;;  %v229_v4 = vld [vmem:[%s1362_s7 + $0x1b8] sm:$0xff] }
  0x20   : > { %v198_v5 = vld [vmem:[%s1362_s7 + $0xc0] sm:$0xff]  ;;  %v199_v7 = vld [vmem:[%s1362_s7 + $0xc8] sm:$0xff]  ;;  %v200_v9 = vld [vmem:[%s1362_s7 + $0xd0] sm:$0xff] }
  0x21   : > { %1269 = vmatpush3.bf16.msk.msra.mxu0 %vm1265_vm3, %v1264_v22  ;;  %v230_v6 = vld [vmem:[%s1362_s7 + $0x1c0] sm:$0xff]  ;;  %v231_v8 = vld [vmem:[%s1362_s7 + $0x1c8] sm:$0xff]  ;;  %v232_v10 = vld [vmem:[%s1362_s7 + $0x1d0] sm:$0xff] }
  0x22   : > { %1283 = vmatpush3.bf16.msk.msra.mxu1 %vm1265_vm3, %v1264_v22  ;;  %v201_v11 = vld [vmem:[%s1362_s7 + $0xd8] sm:$0xff]  ;;  %v202_v13 = vld [vmem:[%s1362_s7 + $0xe0] sm:$0xff]  ;;  %v203_v15 = vld [vmem:[%s1362_s7 + $0xe8] sm:$0xff] }
  0x23   : > { %v233_v12 = vld [vmem:[%s1362_s7 + $0x1d8] sm:$0xff]  ;;  %v234_v14 = vld [vmem:[%s1362_s7 + $0x1e0] sm:$0xff]  ;;  %v235_v16 = vld [vmem:[%s1362_s7 + $0x1e8] sm:$0xff] }
  0x24   : > { %1145 = vmatmul.mubr.msk.f32.vlgmr.msra.gmra.mrb[0].mxu0 %vm259_vm0, %v175_v23  ;;  %v204_v17 = vld [vmem:[%s1362_s7 + $0xf0] sm:$0xff]  ;;  %v205_v19 = vld [vmem:[%s1362_s7 + $0xf8] sm:$0xff] }
  0x25   : > { %1193 = vmatmul.mubr.msk.f32.vlgmr.msra.gmra.mrb[0].mxu1 %vm259_vm0, %v207_v24  ;;  %1147 = vmatprep.mubr.msk.f32.mxu0 %vm259_vm0, %v176_v25  ;;  %v236_v18 = vld [vmem:[%s1362_s7 + $0x1f0] sm:$0xff]  ;;  %v237_v20 = vld [vmem:[%s1362_s7 + $0x1f8] sm:$0xff] }
  0x26   : > { %1195 = vmatprep.mubr.msk.f32.mxu1 %vm259_vm0, %v208_v26 }
  0x28   : > { %1148 = vmatmul.mubr.msk.f32.gmra.mrb[2].mxu0 %vm259_vm0, %v177_v27 }
  0x29   : > { %1196 = vmatmul.mubr.msk.f32.gmra.mrb[2].mxu1 %vm259_vm0, %v209_v28  ;;  %1150 = vmatprep.mubr.msk.f32.mxu0 %vm259_vm0, %v178_v29 }
  0x2a   : > { %1198 = vmatprep.mubr.msk.f32.mxu1 %vm259_vm0, %v210_v30 }
  0x2c   : > { %1151 = vmatmul.mubr.msk.f32.gmra.mrb[4].mxu0 %vm259_vm0, %v179_v31 }
  0x2d   : > { %1199 = vmatmul.mubr.msk.f32.gmra.mrb[4].mxu1 %vm259_vm0, %v211_v32  ;;  %1153 = vmatprep.mubr.msk.f32.mxu0 %vm259_vm0, %v180_v33 }
  0x2e   : > { %1201 = vmatprep.mubr.msk.f32.mxu1 %vm259_vm0, %v212_v34 }
  0x30   : > { %1154 = vmatmul.mubr.msk.f32.gmra.mrb[6].mxu0 %vm259_vm0, %v181_v35 }
  0x31   : > { %1202 = vmatmul.mubr.msk.f32.gmra.mrb[6].mxu1 %vm259_vm0, %v213_v36  ;;  %1156 = vmatprep.mubr.msk.f32.mxu0 %vm259_vm0, %v182_v37 }
  0x32   : > { %1204 = vmatprep.mubr.msk.f32.mxu1 %vm259_vm0, %v214_v38 }
  0x34   : > { %1157 = vmatmul.mubr.msk.f32.gmra.mrb[8].mxu0 %vm259_vm0, %v183_v39 }
  0x35   : > { %1205 = vmatmul.mubr.msk.f32.gmra.mrb[8].mxu1 %vm259_vm0, %v215_v40  ;;  %1159 = vmatprep.mubr.msk.f32.mxu0 %vm259_vm0, %v184_v41 }
  0x36   : > { %1207 = vmatprep.mubr.msk.f32.mxu1 %vm259_vm0, %v216_v42 }
  0x38   : > { %1160 = vmatmul.mubr.msk.f32.gmra.mrb[10].mxu0 %vm259_vm0, %v185_v43 }
  0x39   : > { %1208 = vmatmul.mubr.msk.f32.gmra.mrb[10].mxu1 %vm259_vm0, %v217_v44  ;;  %1162 = vmatprep.mubr.msk.f32.mxu0 %vm259_vm0, %v186_v45 }
  0x3a   : > { %1210 = vmatprep.mubr.msk.f32.mxu1 %vm259_vm0, %v218_v46 }
  0x3c   : > { %1163 = vmatmul.mubr.msk.f32.gmra.mrb[12].mxu0 %vm259_vm0, %v187_v47 }
  0x3d   : > { %1211 = vmatmul.mubr.msk.f32.gmra.mrb[12].mxu1 %vm259_vm0, %v219_v48  ;;  %1165 = vmatprep.mubr.msk.f32.mxu0 %vm259_vm0, %v188_v49 }
  0x3e   : > { %1213 = vmatprep.mubr.msk.f32.mxu1 %vm259_vm0, %v220_v50 }
  0x40   : > { %1166 = vmatmul.mubr.msk.f32.gmra.mrb[14].mxu0 %vm259_vm0, %v189_v51 }
  0x41   : > { %1214 = vmatmul.mubr.msk.f32.gmra.mrb[14].mxu1 %vm259_vm0, %v221_v52  ;;  %1168 = vmatprep.mubr.msk.f32.mxu0 %vm259_vm0, %v190_v53 }
  0x42   : > { %1216 = vmatprep.mubr.msk.f32.mxu1 %vm259_vm0, %v222_v54 }
  0x44   : > { %1169 = vmatmul.mubr.msk.f32.gmra.mrb[16].mxu0 %vm259_vm0, %v191_v55 }
  0x45   : > { %1217 = vmatmul.mubr.msk.f32.gmra.mrb[16].mxu1 %vm259_vm0, %v223_v56  ;;  %1171 = vmatprep.mubr.msk.f32.mxu0 %vm259_vm0, %v192_v57 }
  0x46   : > { %1219 = vmatprep.mubr.msk.f32.mxu1 %vm259_vm0, %v224_v58 }
  0x48   : > { %1172 = vmatmul.mubr.msk.f32.gmra.mrb[18].mxu0 %vm259_vm0, %v193_v59 }
  0x49   : > { %1220 = vmatmul.mubr.msk.f32.gmra.mrb[18].mxu1 %vm259_vm0, %v225_v60  ;;  %1174 = vmatprep.mubr.msk.f32.mxu0 %vm259_vm0, %v194_v61 }
  0x4a   : > { %1222 = vmatprep.mubr.msk.f32.mxu1 %vm259_vm0, %v226_v62 }
  0x4c   : > { %1175 = vmatmul.mubr.msk.f32.gmra.mrb[20].mxu0 %vm259_vm0, %v195_v63 }
  0x4d   : > { %1223 = vmatmul.mubr.msk.f32.gmra.mrb[20].mxu1 %vm259_vm0, %v227_v0  ;;  %1177 = vmatprep.mubr.msk.f32.mxu0 %vm259_vm0, %v196_v1 }
  0x4e   : > { %1225 = vmatprep.mubr.msk.f32.mxu1 %vm259_vm0, %v228_v2 }
  0x50   : > { %1178 = vmatmul.mubr.msk.f32.gmra.mrb[22].mxu0 %vm259_vm0, %v197_v3 }
  0x51   : > { %1226 = vmatmul.mubr.msk.f32.gmra.mrb[22].mxu1 %vm259_vm0, %v229_v4  ;;  %1180 = vmatprep.mubr.msk.f32.mxu0 %vm259_vm0, %v198_v5 }
  0x52   : > { %1228 = vmatprep.mubr.msk.f32.mxu1 %vm259_vm0, %v230_v6 }
  0x54   : > { %1181 = vmatmul.mubr.msk.f32.gmra.mrb[24].mxu0 %vm259_vm0, %v199_v7 }
  0x55   : > { %1229 = vmatmul.mubr.msk.f32.gmra.mrb[24].mxu1 %vm259_vm0, %v231_v8  ;;  %1183 = vmatprep.mubr.msk.f32.mxu0 %vm259_vm0, %v200_v9 }
  0x56   : > { %1231 = vmatprep.mubr.msk.f32.mxu1 %vm259_vm0, %v232_v10 }
  0x58   : > { %1184 = vmatmul.mubr.msk.f32.gmra.mrb[26].mxu0 %vm259_vm0, %v201_v11 }
  0x59   : > { %1232 = vmatmul.mubr.msk.f32.gmra.mrb[26].mxu1 %vm259_vm0, %v233_v12  ;;  %1186 = vmatprep.mubr.msk.f32.mxu0 %vm259_vm0, %v202_v13 }
  0x5a   : > { %1234 = vmatprep.mubr.msk.f32.mxu1 %vm259_vm0, %v234_v14 }
  0x5c   : > { %1187 = vmatmul.mubr.msk.f32.gmra.mrb[28].mxu0 %vm259_vm0, %v203_v15 }
  0x5d   : > { %1235 = vmatmul.mubr.msk.f32.gmra.mrb[28].mxu1 %vm259_vm0, %v235_v16  ;;  %1189 = vmatprep.mubr.msk.f32.mxu0 %vm259_vm0, %v204_v17 }
  0x5e   : > { %1237 = vmatprep.mubr.msk.f32.mxu1 %vm259_vm0, %v236_v18 }
  0x60   : > { %1190 = vmatmul.mubr.msk.f32.gmra.mrb[30].mxu0 %vm259_vm0, %v205_v19 }
  0x61   : > { %1238 = vmatmul.mubr.msk.f32.gmra.mrb[30].mxu1 %vm259_vm0, %v237_v20 }
  0xf7   : > { %v1146_v22 = vpop.f32.mrb[0].mxu0 }
  0xf8   : > { %v1194_v23 = vpop.f32.mrb[0].mxu1  ;;  %v528_v24 = vadd.f32 %v1146_v22, %v1513_v21  ;;  %v522_v26 = vpop.f32.mrb[1].mxu0 }
  0xf9   : > { %v688_v25 = vadd.f32 %v1194_v23, %v1513_v21  ;;  %v682_v27 = vpop.f32.mrb[1].mxu1  ;;  %v523_v28 = vadd.f32 %v1513_v21, %v522_v26 }
  0xfa   : > { %v683_v29 = vadd.f32 %v1513_v21, %v682_v27  ;;  %842 = vst [vmem:[%s1520_s26 + $0x8] sm:$0xff] %v528_v24 }
  0xfb   : > { %874 = vst [vmem:[%s1520_s26 + $0x108] sm:$0xff] %v688_v25  ;;  %841 = vst [vmem:[%s1520_s26] sm:$0xff] %v523_v28  ;;  %v1149_v30 = vpop.f32.mrb[2].mxu0 }
  0xfc   : > { %873 = vst [vmem:[%s1520_s26 + $0x100] sm:$0xff] %v683_v29  ;;  %v1197_v31 = vpop.f32.mrb[2].mxu1  ;;  %v538_v32 = vadd.f32 %v1149_v30, %v1513_v21  ;;  %v532_v34 = vpop.f32.mrb[3].mxu0 }
  0xfd   : > { %v698_v33 = vadd.f32 %v1197_v31, %v1513_v21  ;;  %v692_v35 = vpop.f32.mrb[3].mxu1  ;;  %v533_v36 = vadd.f32 %v1513_v21, %v532_v34 }
  0xfe   : > { %v693_v37 = vadd.f32 %v1513_v21, %v692_v35  ;;  %844 = vst [vmem:[%s1520_s26 + $0x18] sm:$0xff] %v538_v32 }
  0xff   : > { %876 = vst [vmem:[%s1520_s26 + $0x118] sm:$0xff] %v698_v33  ;;  %843 = vst [vmem:[%s1520_s26 + $0x10] sm:$0xff] %v533_v36  ;;  %v1152_v38 = vpop.f32.mrb[4].mxu0 }
 0x100   : > { %875 = vst [vmem:[%s1520_s26 + $0x110] sm:$0xff] %v693_v37  ;;  %v1200_v39 = vpop.f32.mrb[4].mxu1  ;;  %v548_v40 = vadd.f32 %v1152_v38, %v1513_v21  ;;  %v542_v42 = vpop.f32.mrb[5].mxu0 }
 0x101   : > { %v708_v41 = vadd.f32 %v1200_v39, %v1513_v21  ;;  %v702_v43 = vpop.f32.mrb[5].mxu1  ;;  %v543_v44 = vadd.f32 %v1513_v21, %v542_v42 }
 0x102   : > { %v703_v45 = vadd.f32 %v1513_v21, %v702_v43  ;;  %846 = vst [vmem:[%s1520_s26 + $0x28] sm:$0xff] %v548_v40 }
 0x103   : > { %878 = vst [vmem:[%s1520_s26 + $0x128] sm:$0xff] %v708_v41  ;;  %845 = vst [vmem:[%s1520_s26 + $0x20] sm:$0xff] %v543_v44  ;;  %v1155_v46 = vpop.f32.mrb[6].mxu0 }
 0x104   : > { %877 = vst [vmem:[%s1520_s26 + $0x120] sm:$0xff] %v703_v45  ;;  %v1203_v47 = vpop.f32.mrb[6].mxu1  ;;  %v558_v48 = vadd.f32 %v1155_v46, %v1513_v21  ;;  %v552_v50 = vpop.f32.mrb[7].mxu0 }
 0x105   : > { %v718_v49 = vadd.f32 %v1203_v47, %v1513_v21  ;;  %v712_v51 = vpop.f32.mrb[7].mxu1  ;;  %v553_v52 = vadd.f32 %v1513_v21, %v552_v50 }
 0x106   : > { %v713_v53 = vadd.f32 %v1513_v21, %v712_v51  ;;  %848 = vst [vmem:[%s1520_s26 + $0x38] sm:$0xff] %v558_v48 }
 0x107   : > { %880 = vst [vmem:[%s1520_s26 + $0x138] sm:$0xff] %v718_v49  ;;  %847 = vst [vmem:[%s1520_s26 + $0x30] sm:$0xff] %v553_v52  ;;  %v1158_v54 = vpop.f32.mrb[8].mxu0 }
 0x108   : > { %879 = vst [vmem:[%s1520_s26 + $0x130] sm:$0xff] %v713_v53  ;;  %v1206_v55 = vpop.f32.mrb[8].mxu1  ;;  %v568_v56 = vadd.f32 %v1158_v54, %v1513_v21  ;;  %v562_v58 = vpop.f32.mrb[9].mxu0 }
 0x109   : > { %v728_v57 = vadd.f32 %v1206_v55, %v1513_v21  ;;  %v722_v59 = vpop.f32.mrb[9].mxu1  ;;  %v563_v60 = vadd.f32 %v1513_v21, %v562_v58 }
 0x10a   : > { %v723_v61 = vadd.f32 %v1513_v21, %v722_v59  ;;  %850 = vst [vmem:[%s1520_s26 + $0x48] sm:$0xff] %v568_v56 }
 0x10b   : > { %882 = vst [vmem:[%s1520_s26 + $0x148] sm:$0xff] %v728_v57  ;;  %849 = vst [vmem:[%s1520_s26 + $0x40] sm:$0xff] %v563_v60  ;;  %v1161_v62 = vpop.f32.mrb[10].mxu0 }
 0x10c   : > { %881 = vst [vmem:[%s1520_s26 + $0x140] sm:$0xff] %v723_v61  ;;  %v1209_v63 = vpop.f32.mrb[10].mxu1  ;;  %v578_v0 = vadd.f32 %v1161_v62, %v1513_v21  ;;  %v572_v2 = vpop.f32.mrb[11].mxu0 }
 0x10d   : > { %v738_v1 = vadd.f32 %v1209_v63, %v1513_v21  ;;  %v732_v3 = vpop.f32.mrb[11].mxu1  ;;  %v573_v4 = vadd.f32 %v1513_v21, %v572_v2 }
 0x10e   : > { %v733_v5 = vadd.f32 %v1513_v21, %v732_v3  ;;  %852 = vst [vmem:[%s1520_s26 + $0x58] sm:$0xff] %v578_v0 }
 0x10f   : > { %884 = vst [vmem:[%s1520_s26 + $0x158] sm:$0xff] %v738_v1  ;;  %851 = vst [vmem:[%s1520_s26 + $0x50] sm:$0xff] %v573_v4  ;;  %v1164_v6 = vpop.f32.mrb[12].mxu0 }
 0x110   : > { %883 = vst [vmem:[%s1520_s26 + $0x150] sm:$0xff] %v733_v5  ;;  %v1212_v7 = vpop.f32.mrb[12].mxu1  ;;  %v588_v8 = vadd.f32 %v1164_v6, %v1513_v21  ;;  %v582_v10 = vpop.f32.mrb[13].mxu0 }
 0x111   : > { %v748_v9 = vadd.f32 %v1212_v7, %v1513_v21  ;;  %v742_v11 = vpop.f32.mrb[13].mxu1  ;;  %v583_v12 = vadd.f32 %v1513_v21, %v582_v10 }
 0x112   : > { %v743_v13 = vadd.f32 %v1513_v21, %v742_v11  ;;  %854 = vst [vmem:[%s1520_s26 + $0x68] sm:$0xff] %v588_v8 }
 0x113   : > { %886 = vst [vmem:[%s1520_s26 + $0x168] sm:$0xff] %v748_v9  ;;  %853 = vst [vmem:[%s1520_s26 + $0x60] sm:$0xff] %v583_v12  ;;  %v1167_v14 = vpop.f32.mrb[14].mxu0 }
 0x114   : > { %885 = vst [vmem:[%s1520_s26 + $0x160] sm:$0xff] %v743_v13  ;;  %v1215_v15 = vpop.f32.mrb[14].mxu1  ;;  %v598_v16 = vadd.f32 %v1167_v14, %v1513_v21  ;;  %v592_v18 = vpop.f32.mrb[15].mxu0 }
 0x115   : > { %v758_v17 = vadd.f32 %v1215_v15, %v1513_v21  ;;  %v752_v19 = vpop.f32.mrb[15].mxu1  ;;  %v593_v20 = vadd.f32 %v1513_v21, %v592_v18 }
 0x116   : > { %v753_v22 = vadd.f32 %v1513_v21, %v752_v19  ;;  %856 = vst [vmem:[%s1520_s26 + $0x78] sm:$0xff] %v598_v16 }
 0x117   : > { %888 = vst [vmem:[%s1520_s26 + $0x178] sm:$0xff] %v758_v17  ;;  %855 = vst [vmem:[%s1520_s26 + $0x70] sm:$0xff] %v593_v20  ;;  %v1170_v23 = vpop.f32.mrb[16].mxu0 }
 0x118   : > { %887 = vst [vmem:[%s1520_s26 + $0x170] sm:$0xff] %v753_v22  ;;  %v1218_v24 = vpop.f32.mrb[16].mxu1  ;;  %v608_v25 = vadd.f32 %v1170_v23, %v1513_v21  ;;  %v602_v27 = vpop.f32.mrb[17].mxu0 }
 0x119   : > { %v768_v26 = vadd.f32 %v1218_v24, %v1513_v21  ;;  %v762_v28 = vpop.f32.mrb[17].mxu1  ;;  %v603_v29 = vadd.f32 %v1513_v21, %v602_v27 }
 0x11a   : > { %v763_v30 = vadd.f32 %v1513_v21, %v762_v28  ;;  %858 = vst [vmem:[%s1520_s26 + $0x88] sm:$0xff] %v608_v25 }
 0x11b   : > { %890 = vst [vmem:[%s1520_s26 + $0x188] sm:$0xff] %v768_v26  ;;  %857 = vst [vmem:[%s1520_s26 + $0x80] sm:$0xff] %v603_v29  ;;  %v1173_v31 = vpop.f32.mrb[18].mxu0 }
 0x11c   : > { %889 = vst [vmem:[%s1520_s26 + $0x180] sm:$0xff] %v763_v30  ;;  %v1221_v32 = vpop.f32.mrb[18].mxu1  ;;  %v618_v33 = vadd.f32 %v1173_v31, %v1513_v21  ;;  %v612_v35 = vpop.f32.mrb[19].mxu0 }
 0x11d   : > { %v778_v34 = vadd.f32 %v1221_v32, %v1513_v21  ;;  %v772_v36 = vpop.f32.mrb[19].mxu1  ;;  %v613_v37 = vadd.f32 %v1513_v21, %v612_v35 }
 0x11e   : > { %v773_v38 = vadd.f32 %v1513_v21, %v772_v36  ;;  %860 = vst [vmem:[%s1520_s26 + $0x98] sm:$0xff] %v618_v33 }
 0x11f   : > { %892 = vst [vmem:[%s1520_s26 + $0x198] sm:$0xff] %v778_v34  ;;  %859 = vst [vmem:[%s1520_s26 + $0x90] sm:$0xff] %v613_v37  ;;  %v1176_v39 = vpop.f32.mrb[20].mxu0 }
 0x120   : > { %891 = vst [vmem:[%s1520_s26 + $0x190] sm:$0xff] %v773_v38  ;;  %v1224_v40 = vpop.f32.mrb[20].mxu1  ;;  %v628_v41 = vadd.f32 %v1176_v39, %v1513_v21  ;;  %v622_v43 = vpop.f32.mrb[21].mxu0 }
 0x121   : > { %v788_v42 = vadd.f32 %v1224_v40, %v1513_v21  ;;  %v782_v44 = vpop.f32.mrb[21].mxu1  ;;  %v623_v45 = vadd.f32 %v1513_v21, %v622_v43 }
 0x122   : > { %v783_v46 = vadd.f32 %v1513_v21, %v782_v44  ;;  %862 = vst [vmem:[%s1520_s26 + $0xa8] sm:$0xff] %v628_v41 }
 0x123   : > { %894 = vst [vmem:[%s1520_s26 + $0x1a8] sm:$0xff] %v788_v42  ;;  %861 = vst [vmem:[%s1520_s26 + $0xa0] sm:$0xff] %v623_v45  ;;  %v1179_v47 = vpop.f32.mrb[22].mxu0 }
 0x124   : > { %893 = vst [vmem:[%s1520_s26 + $0x1a0] sm:$0xff] %v783_v46  ;;  %v1227_v48 = vpop.f32.mrb[22].mxu1  ;;  %v638_v49 = vadd.f32 %v1179_v47, %v1513_v21  ;;  %v632_v51 = vpop.f32.mrb[23].mxu0 }
 0x125   : > { %v798_v50 = vadd.f32 %v1227_v48, %v1513_v21  ;;  %v792_v52 = vpop.f32.mrb[23].mxu1  ;;  %v633_v53 = vadd.f32 %v1513_v21, %v632_v51 }
 0x126   : > { %v793_v54 = vadd.f32 %v1513_v21, %v792_v52  ;;  %864 = vst [vmem:[%s1520_s26 + $0xb8] sm:$0xff] %v638_v49 }
 0x127   : > { %896 = vst [vmem:[%s1520_s26 + $0x1b8] sm:$0xff] %v798_v50  ;;  %863 = vst [vmem:[%s1520_s26 + $0xb0] sm:$0xff] %v633_v53  ;;  %v1182_v55 = vpop.f32.mrb[24].mxu0 }
 0x128   : > { %895 = vst [vmem:[%s1520_s26 + $0x1b0] sm:$0xff] %v793_v54  ;;  %v1230_v56 = vpop.f32.mrb[24].mxu1  ;;  %v648_v57 = vadd.f32 %v1182_v55, %v1513_v21  ;;  %v642_v59 = vpop.f32.mrb[25].mxu0 }
 0x129   : > { %v808_v58 = vadd.f32 %v1230_v56, %v1513_v21  ;;  %v802_v60 = vpop.f32.mrb[25].mxu1  ;;  %v643_v61 = vadd.f32 %v1513_v21, %v642_v59 }
 0x12a   : > { %v803_v62 = vadd.f32 %v1513_v21, %v802_v60  ;;  %866 = vst [vmem:[%s1520_s26 + $0xc8] sm:$0xff] %v648_v57 }
 0x12b   : > { %898 = vst [vmem:[%s1520_s26 + $0x1c8] sm:$0xff] %v808_v58  ;;  %865 = vst [vmem:[%s1520_s26 + $0xc0] sm:$0xff] %v643_v61  ;;  %v1185_v63 = vpop.f32.mrb[26].mxu0 }
 0x12c   : > { %897 = vst [vmem:[%s1520_s26 + $0x1c0] sm:$0xff] %v803_v62  ;;  %v1233_v0 = vpop.f32.mrb[26].mxu1  ;;  %v658_v1 = vadd.f32 %v1185_v63, %v1513_v21  ;;  %v652_v3 = vpop.f32.mrb[27].mxu0 }
 0x12d   : > { %v818_v2 = vadd.f32 %v1233_v0, %v1513_v21  ;;  %v812_v4 = vpop.f32.mrb[27].mxu1  ;;  %v653_v5 = vadd.f32 %v1513_v21, %v652_v3 }
 0x12e   : > { %v813_v6 = vadd.f32 %v1513_v21, %v812_v4  ;;  %868 = vst [vmem:[%s1520_s26 + $0xd8] sm:$0xff] %v658_v1 }
 0x12f   : > { %900 = vst [vmem:[%s1520_s26 + $0x1d8] sm:$0xff] %v818_v2  ;;  %867 = vst [vmem:[%s1520_s26 + $0xd0] sm:$0xff] %v653_v5  ;;  %v1188_v7 = vpop.f32.mrb[28].mxu0 }
 0x130   : > { %899 = vst [vmem:[%s1520_s26 + $0x1d0] sm:$0xff] %v813_v6  ;;  %v1236_v8 = vpop.f32.mrb[28].mxu1  ;;  %v668_v9 = vadd.f32 %v1188_v7, %v1513_v21  ;;  %v662_v11 = vpop.f32.mrb[29].mxu0 }
 0x131   : > { %v828_v10 = vadd.f32 %v1236_v8, %v1513_v21  ;;  %v822_v12 = vpop.f32.mrb[29].mxu1  ;;  %v663_v13 = vadd.f32 %v1513_v21, %v662_v11 }
 0x132   : > { %v823_v14 = vadd.f32 %v1513_v21, %v822_v12  ;;  %870 = vst [vmem:[%s1520_s26 + $0xe8] sm:$0xff] %v668_v9 }
 0x133   : > { %902 = vst [vmem:[%s1520_s26 + $0x1e8] sm:$0xff] %v828_v10  ;;  %869 = vst [vmem:[%s1520_s26 + $0xe0] sm:$0xff] %v663_v13  ;;  %v1191_v15 = vpop.f32.mrb[30].mxu0 }
 0x134   : > { %901 = vst [vmem:[%s1520_s26 + $0x1e0] sm:$0xff] %v823_v14  ;;  %v1239_v16 = vpop.f32.mrb[30].mxu1  ;;  %v678_v17 = vadd.f32 %v1191_v15, %v1513_v21  ;;  %v672_v19 = vpop.f32.mrb[31].mxu0 }
 0x135   : > { %v838_v18 = vadd.f32 %v1239_v16, %v1513_v21  ;;  %v832_v20 = vpop.f32.mrb[31].mxu1  ;;  %v673_v22 = vadd.f32 %v1513_v21, %v672_v19 }
 0x136   : > { %v833_v23 = vadd.f32 %v1513_v21, %v832_v20  ;;  %872 = vst [vmem:[%s1520_s26 + $0xf8] sm:$0xff] %v678_v17 }
 0x137   : > { %904 = vst [vmem:[%s1520_s26 + $0x1f8] sm:$0xff] %v838_v18  ;;  %871 = vst [vmem:[%s1520_s26 + $0xf0] sm:$0xff] %v673_v22 }
 0x138   : > { %903 = vst [vmem:[%s1520_s26 + $0x1f0] sm:$0xff] %v833_v23 }
 0x139 PF: > { %s13_s12 = sadd.s32 1, %s1299_s12  }
 0x13a   : > { %p10_p4 = scmp.ge.s32.totalorder %s13_s12, 4  }
 0x13c   :  { %12 = sbr.rel (!%p10_p4) target bundleno = 1 (0x1), region = 62 }

</bundles_post_ra>
